<compile_context>
chip_gen: v7x
topology: tpu7x:2x2x1
jax: 0.10.0
libtpu: 0.0.40
codegen_flags: <defaults>
</compile_context>

<pallas_src>
import jax
import jax.numpy as jnp
from jax.experimental import pallas as pl
from jax.experimental.pallas import tpu as pltpu


def _round_up(x, m):
    return (x + m - 1) // m * m


def _make_fused_kernel(kd, taps, c8, r_tile):
    """Per-grid-step kernel.

    taps: tuple of (dz, lane_offset) pairs, one per (dz, dy, dx) filter tap,
    ordered tap-major / channel-minor to match the fused-weight K layout.
    """

    def kernel(*refs):
        a_refs = refs[:kd]          # kd x (1, 1, 1, C8, tile_len)   bf16
        w_ref = refs[kd]            # (Co_pad, K)                    bf16 (resident)
        b_ref = refs[kd + 1]        # (Co_pad, 1)                    f32  (resident)
        o_ref = refs[kd + 2]        # (1, 1, 1, Co_pad, r_tile)      out dtype
        col_ref = refs[kd + 3]      # (K, r_tile)                    bf16 scratch

        # im2col: one statically shifted (C8, r_tile) copy per tap into the
        # VMEM scratch (8-aligned sublane blocks, static lane offsets).
        for j, (dz, off) in enumerate(taps):
            col_ref[j * c8:(j + 1) * c8, :] = (
                a_refs[dz][0, 0, 0, :, off:off + r_tile])

        # One long-K MXU matmul does the whole (channel x tap) contraction; the
        # (Co_pad, r_tile) f32 result stays in vregs through the bias add and
        # the cast, then is stored full-width (lane aligned, unmasked).
        res = jnp.dot(w_ref[...], col_ref[...],
                      preferred_element_type=jnp.float32)
        o_ref[0, 0, 0, :, :] = (res + b_ref[...]).astype(o_ref.dtype)

    return kernel


def fused_conv3d_same(x, weights, biases, *, compute_dtype=jnp.bfloat16,
                      out_dtype=None, lane_tile=None):
    """Fused multi-head 'same' Conv3d (cross-correlation, PyTorch semantics).

    x: (N, Cin, D, H, W); weights: list of (Cout_i, Cin, kd, kh, kw) sharing one
    kernel size; biases: list of (Cout_i,).  Returns (N, sum Cout_i, D, H, W).

    compute_dtype: MXU operand dtype.  bf16 (default) halves the dominant HBM
      stream; accumulation and the bias add are always f32.  Pass jnp.float32
      for bit-closer parity with the f32 PyTorch Conv3d.
    out_dtype: result dtype (default x.dtype); bf16 halves the output stream.
    lane_tile: optional override (multiple of 128) of the output lane tile.
    """
    N, C, D, H, W = x.shape
    kd, kh, kw = weights[0].shape[2:]
    assert all(w.shape[1:] == (C, kd, kh, kw) for w in weights)
    # TODO(synk): even kernel sizes need PyTorch-style asymmetric 'same' padding.
    assert kd % 2 == 1 and kh % 2 == 1 and kw % 2 == 1, "odd kernel sizes only"
    if out_dtype is None:
        out_dtype = x.dtype

    pd, ph, pw = kd // 2, kh // 2, kw // 2
    Hp, Wp = H + 2 * ph, W + 2 * pw
    Dp = D + 2 * pd
    kprod = kd * kh * kw

    couts = [w.shape[0] for w in weights]
    Co = sum(couts)
    Co_pad = _round_up(Co, 8)
    C8 = _round_up(C, 8)
    K = kprod * C8
    cdt_itemsize = jnp.dtype(compute_dtype).itemsize
    out_itemsize = jnp.dtype(out_dtype).itemsize

    # Output lane index r = h*Wp + w (rows with w >= W are throwaway lanes and
    # are sliced off in the epilogue).  Each lane tile needs a `max_off` halo.
    max_off = (kh - 1) * Wp + (kw - 1)
    halo = _round_up(max_off, 128)
    if lane_tile is None:
        # Duplication <= ~12% (r_tile >= 8*halo) while keeping the (K, r_tile)
        # im2col scratch around <= 6 MiB.
        col_budget = 6 * 1024 * 1024
        r_cap = max(128, (col_budget // (K * cdt_itemsize)) // 128 * 128)
        r_tile = max(1024, min(8 * halo, r_cap))
        r_tile = min(r_tile, _round_up(H * Wp, 128))
    else:
        assert lane_tile > 0 and lane_tile % 128 == 0
        r_tile = lane_tile
    T = -(-(H * Wp) // r_tile)
    tile_len = r_tile + halo
    L_need = (T - 1) * r_tile + tile_len          # >= Hp*Wp by construction

    # ---- activation: one fused cast+pad+transpose+window pass ->
    #      (N, Dp, T, C8, tile_len): channels on sublanes, flattened padded
    #      (h, w) lane tiles (with halo overlap) on lanes.
    xc = x.astype(compute_dtype)
    xp = jnp.pad(xc, ((0, 0), (0, C8 - C), (pd, pd), (ph, ph), (pw, pw)))
    Af = jnp.transpose(xp, (0, 2, 1, 3, 4)).reshape(N, Dp, C8, Hp * Wp)
    Af = jnp.pad(Af, ((0, 0), (0, 0), (0, 0), (0, L_need - Hp * Wp)))
    A = jnp.stack([Af[..., t * r_tile:t * r_tile + tile_len] for t in range(T)],
                  axis=2)

    # ---- fused weights (Co_pad, K), K ordered tap-major / channel-minor to
    #      match the im2col scratch fill; bias (Co_pad, 1) f32.
    wf = jnp.concatenate(weights, axis=0)                      # (Co,C,kd,kh,kw)
    wf = jnp.pad(wf, ((0, Co_pad - Co), (0, C8 - C), (0, 0), (0, 0), (0, 0)))
    wf = wf.reshape(Co_pad, C8, kprod)
    wf = jnp.transpose(wf, (0, 2, 1)).reshape(Co_pad, K).astype(compute_dtype)
    bf = jnp.pad(jnp.concatenate(biases), (0, Co_pad - Co))
    bf = bf.reshape(Co_pad, 1).astype(jnp.float32)

    taps = tuple((dz, dy * Wp + dx)
                 for dz in range(kd) for dy in range(kh) for dx in range(kw))
    kernel = _make_fused_kernel(kd, taps, C8, r_tile)

    in_specs = [
        pl.BlockSpec((1, 1, 1, C8, tile_len),
                     (lambda n, d, t, dz=dz: (n, d + dz, t, 0, 0)))
        for dz in range(kd)
    ]
    in_specs.append(pl.BlockSpec((Co_pad, K), lambda n, d, t: (0, 0)))
    in_specs.append(pl.BlockSpec((Co_pad, 1), lambda n, d, t: (0, 0)))
    out_spec = pl.BlockSpec((1, 1, 1, Co_pad, r_tile),
                            lambda n, d, t: (n, d, t, 0, 0))

    # VMEM budget (explicit limit: v5e's scoped default is only 16 MiB).
    act_block = C8 * tile_len * cdt_itemsize
    out_block = Co_pad * r_tile * out_itemsize
    w_bytes = Co_pad * _round_up(K, 128) * cdt_itemsize
    col_bytes = K * r_tile * cdt_itemsize
    need = (2 * (kd * act_block + out_block) + 2 * (w_bytes + 8 * 128 * 4)
            + col_bytes)
    vmem_limit = int(min(64 * 1024 * 1024, max(32 * 1024 * 1024, 2 * need)))

    steps = N * D * T
    cost = pl.CostEstimate(
        flops=int(2 * steps * Co_pad * K * r_tile),
        transcendentals=0,
        bytes_accessed=int(kd * steps * act_block + steps * out_block
                           + Co_pad * K * cdt_itemsize + Co * 4))

    out = pl.pallas_call(
        kernel,
        out_shape=jax.ShapeDtypeStruct((N, D, T, Co_pad, r_tile), out_dtype),
        grid_spec=pltpu.PrefetchScalarGridSpec(
            num_scalar_prefetch=0,
            grid=(N, D, T),
            in_specs=in_specs,
            out_specs=out_spec,
            scratch_shapes=[pltpu.VMEM((K, r_tile), compute_dtype)],
        ),
        compiler_params=pltpu.CompilerParams(
            dimension_semantics=("parallel", "parallel", "parallel"),
            vmem_limit_bytes=vmem_limit),
        cost_estimate=cost,
    )(*([A] * kd), wf, bf)

    # (N, D, T, Co_pad, r_tile) -> (N, Co, D, H, W): drop Cout/lane padding,
    # re-expand r = h*Wp + w, slice off the W halo, transpose.  All of this is
    # a single fusible XLA copy pass.
    out = jnp.transpose(out, (0, 1, 3, 2, 4)).reshape(N, D, Co_pad, T * r_tile)
    out = out[:, :, :Co, :H * Wp].reshape(N, D, Co, H, Wp)[..., :W]
    return jnp.transpose(out, (0, 2, 1, 3, 4))


class OutputBlockPallas:
    """JAX/Pallas port of deepem rsunet_act.OutputBlock.

    One 'same'-padded biased Conv3d head per out_spec entry, all heads fused
    into a single Pallas call; __call__(x) returns {name: conv(x)} (NCDHW).
    """

    def __init__(self, in_channels, out_spec, kernel_size, key):
        if isinstance(kernel_size, int):
            kernel_size = (kernel_size,) * 3
        self.kernel_size = tuple(kernel_size)
        kd, kh, kw = self.kernel_size
        fan_in = in_channels * kd * kh * kw
        bound = 1.0 / float(fan_in) ** 0.5
        # Deterministic synthetic init (PyTorch default Conv3d init style).
        self.names, self.params = [], {}
        for k, v in out_spec.items():
            out_channels = v[-4]
            key, wk, bk = jax.random.split(key, 3)
            w = jax.random.uniform(wk, (out_channels, in_channels, kd, kh, kw),
                                   jnp.float32, -bound, bound)
            b = jax.random.uniform(bk, (out_channels,), jnp.float32,
                                   -bound, bound)
            self.names.append(k)
            self.params[k] = (w, b)

    def __call__(self, x):
        weights = [self.params[k][0] for k in self.names]
        biases = [self.params[k][1] for k in self.names]
        fused = fused_conv3d_same(x, weights, biases)
        outs, c0 = {}, 0
        for k, w in zip(self.names, weights):
            c1 = c0 + w.shape[0]
            outs[k] = fused[:, c0:c1]
            c0 = c1
        return outs


def _ref_conv3d_same(x, w, b):
    kd, kh, kw = w.shape[2:]
    out = jax.lax.conv_general_dilated(
        x, w, window_strides=(1, 1, 1),
        padding=((kd // 2, kd // 2), (kh // 2, kh // 2), (kw // 2, kw // 2)),
        dimension_numbers=("NCDHW", "OIDHW", "NCDHW"),
        preferred_element_type=jnp.float32,
        precision=jax.lax.Precision.HIGHEST)
    return out + b.reshape(1, -1, 1, 1, 1)


def _check(out, x, w, b, name):
    ref_bf16 = _ref_conv3d_same(x.astype(jnp.bfloat16), w.astype(jnp.bfloat16), b)
    ref_f32 = _ref_conv3d_same(x, w, b)
    assert out.shape == ref_f32.shape, (name, out.shape, ref_f32.shape)
    # Strict vs bf16-operand / f32-accumulation conv (same rounding as kernel),
    # loose vs the pure-f32 conv.
    assert jnp.allclose(out, ref_bf16, atol=2e-3, rtol=2e-3), name
    assert jnp.allclose(out, ref_f32, atol=3e-2, rtol=3e-2), name


if __name__ == "__main__":
    key = jax.random.PRNGKey(0)
    key, xk, pk1, pk2, xk3, wk3, bk3 = jax.random.split(key, 7)

    # --- Case 1: default OutputBlock config, two heads, kernel (1,5,5). ---
    N, C, D, H, W = 2, 4, 4, 8, 8
    x = jax.random.normal(xk, (N, C, D, H, W), jnp.float32)
    out_spec = {"affinity": (3, D, H, W), "mito": (1, D, H, W)}
    block = OutputBlockPallas(C, out_spec, kernel_size=(1, 5, 5), key=pk1)
    out = {k: jax.block_until_ready(v) for k, v in block(x).items()}
    for k, (w, b) in block.params.items():
        _check(out[k], x, w, b, k)

    # --- Case 2: kd > 1 (depth halo via per-tap BlockSpecs), kernel (3,3,3). ---
    block3 = OutputBlockPallas(C, {"psd": (2, D, H, W)}, kernel_size=(3, 3, 3),
                               key=pk2)
    out3 = {k: jax.block_until_ready(v) for k, v in block3(x).items()}
    for k, (w, b) in block3.params.items():
        _check(out3[k], x, w, b, k)

    # --- Case 3: multiple lane tiles on the grid (forced small lane_tile). ---
    N3, C3, D3, H3, W3 = 1, 4, 2, 16, 16
    x3 = jax.random.normal(xk3, (N3, C3, D3, H3, W3), jnp.float32)
    bound = 1.0 / float(C3 * 1 * 5 * 5) ** 0.5
    w3 = jax.random.uniform(wk3, (3, C3, 1, 5, 5), jnp.float32, -bound, bound)
    b3 = jax.random.uniform(bk3, (3,), jnp.float32, -bound, bound)
    y3 = jax.block_until_ready(fused_conv3d_same(x3, [w3], [b3], lane_tile=128))
    _check(y3, x3, w3, b3, "lane_tiled")

    print("KERNEL_OK")
</pallas_src>

<mosaic_0001>
module attributes {stable_mosaic.version = 11 : i64} {
  func.func @kernel(%arg0: i32, %arg1: i32, %arg2: i32, %arg3: memref<1x1x1x8x256xbf16, #tpu.memory_space<vmem>>, %arg4: memref<8x200xbf16, #tpu.memory_space<vmem>>, %arg5: memref<8x1xf32, #tpu.memory_space<vmem>>, %arg6: memref<1x1x1x8x128xf32, #tpu.memory_space<vmem>>, %arg7: memref<200x128xbf16, #tpu.memory_space<vmem>>) attributes {dimension_semantics = [#tpu.dimension_semantics<parallel>, #tpu.dimension_semantics<parallel>, #tpu.dimension_semantics<parallel>], iteration_bounds = array<i64: 2, 4, 1>, scalar_prefetch = 0 : i64, scratch_operands = 1 : i64, tpu.core_type = #tpu.core_type<tc>, window_params = [{transform_indices = @transform_0, window_bounds = array<i64: 1, 1, 1, 8, 256>}, {pipeline_mode = #tpu.pipeline_mode<synchronous>, transform_indices = @transform_1, window_bounds = array<i64: 8, 200>}, {pipeline_mode = #tpu.pipeline_mode<synchronous>, transform_indices = @transform_2, window_bounds = array<i64: 8, 1>}, {transform_indices = @transform_3, window_bounds = array<i64: 1, 1, 1, 8, 128>}]} {
    %c0 = arith.constant 0 : index
    %c0_0 = arith.constant 0 : index
    %c0_1 = arith.constant 0 : index
    %c0_2 = arith.constant 0 : index
    %c0_3 = arith.constant 0 : index
    %0 = vector.load %arg3[%c0, %c0_0, %c0_1, %c0_2, %c0_3] : memref<1x1x1x8x256xbf16, #tpu.memory_space<vmem>>, vector<1x1x1x8x128xbf16>
    %1 = vector.shape_cast %0 : vector<1x1x1x8x128xbf16> to vector<8x128xbf16>
    %c0_4 = arith.constant 0 : index
    %c0_5 = arith.constant 0 : index
    %2 = vector.load %arg7[%c0_4, %c0_5] : memref<200x128xbf16, #tpu.memory_space<vmem>>, vector<8x128xbf16>
    tpu.vector_store %arg7[%c0_4, %c0_5], %1 {strides = array<i32>} : memref<200x128xbf16, #tpu.memory_space<vmem>>, vector<8x128xbf16>,
    %c0_6 = arith.constant 0 : index
    %c0_7 = arith.constant 0 : index
    %c0_8 = arith.constant 0 : index
    %c0_9 = arith.constant 0 : index
    %c1 = arith.constant 1 : index
    %3 = vector.load %arg3[%c0_6, %c0_7, %c0_8, %c0_9, %c1] : memref<1x1x1x8x256xbf16, #tpu.memory_space<vmem>>, vector<1x1x1x8x128xbf16>
    %4 = vector.shape_cast %3 : vector<1x1x1x8x128xbf16> to vector<8x128xbf16>
    %c8 = arith.constant 8 : index
    %c0_10 = arith.constant 0 : index
    %5 = vector.load %arg7[%c8, %c0_10] : memref<200x128xbf16, #tpu.memory_space<vmem>>, vector<8x128xbf16>
    tpu.vector_store %arg7[%c8, %c0_10], %4 {strides = array<i32>} : memref<200x128xbf16, #tpu.memory_space<vmem>>, vector<8x128xbf16>,
    %c0_11 = arith.constant 0 : index
    %c0_12 = arith.constant 0 : index
    %c0_13 = arith.constant 0 : index
    %c0_14 = arith.constant 0 : index
    %c2 = arith.constant 2 : index
    %6 = vector.load %arg3[%c0_11, %c0_12, %c0_13, %c0_14, %c2] : memref<1x1x1x8x256xbf16, #tpu.memory_space<vmem>>, vector<1x1x1x8x128xbf16>
    %7 = vector.shape_cast %6 : vector<1x1x1x8x128xbf16> to vector<8x128xbf16>
    %c16 = arith.constant 16 : index
    %c0_15 = arith.constant 0 : index
    %8 = vector.load %arg7[%c16, %c0_15] : memref<200x128xbf16, #tpu.memory_space<vmem>>, vector<8x128xbf16>
    tpu.vector_store %arg7[%c16, %c0_15], %7 {strides = array<i32>} : memref<200x128xbf16, #tpu.memory_space<vmem>>, vector<8x128xbf16>,
    %c0_16 = arith.constant 0 : index
    %c0_17 = arith.constant 0 : index
    %c0_18 = arith.constant 0 : index
    %c0_19 = arith.constant 0 : index
    %c3 = arith.constant 3 : index
    %9 = vector.load %arg3[%c0_16, %c0_17, %c0_18, %c0_19, %c3] : memref<1x1x1x8x256xbf16, #tpu.memory_space<vmem>>, vector<1x1x1x8x128xbf16>
    %10 = vector.shape_cast %9 : vector<1x1x1x8x128xbf16> to vector<8x128xbf16>
    %c24 = arith.constant 24 : index
    %c0_20 = arith.constant 0 : index
    %11 = vector.load %arg7[%c24, %c0_20] : memref<200x128xbf16, #tpu.memory_space<vmem>>, vector<8x128xbf16>
    tpu.vector_store %arg7[%c24, %c0_20], %10 {strides = array<i32>} : memref<200x128xbf16, #tpu.memory_space<vmem>>, vector<8x128xbf16>,
    %c0_21 = arith.constant 0 : index
    %c0_22 = arith.constant 0 : index
    %c0_23 = arith.constant 0 : index
    %c0_24 = arith.constant 0 : index
    %c4 = arith.constant 4 : index
    %12 = vector.load %arg3[%c0_21, %c0_22, %c0_23, %c0_24, %c4] : memref<1x1x1x8x256xbf16, #tpu.memory_space<vmem>>, vector<1x1x1x8x128xbf16>
    %13 = vector.shape_cast %12 : vector<1x1x1x8x128xbf16> to vector<8x128xbf16>
    %c32 = arith.constant 32 : index
    %c0_25 = arith.constant 0 : index
    %14 = vector.load %arg7[%c32, %c0_25] : memref<200x128xbf16, #tpu.memory_space<vmem>>, vector<8x128xbf16>
    tpu.vector_store %arg7[%c32, %c0_25], %13 {strides = array<i32>} : memref<200x128xbf16, #tpu.memory_space<vmem>>, vector<8x128xbf16>,
    %c0_26 = arith.constant 0 : index
    %c0_27 = arith.constant 0 : index
    %c0_28 = arith.constant 0 : index
    %c0_29 = arith.constant 0 : index
    %c12 = arith.constant 12 : index
    %15 = vector.load %arg3[%c0_26, %c0_27, %c0_28, %c0_29, %c12] : memref<1x1x1x8x256xbf16, #tpu.memory_space<vmem>>, vector<1x1x1x8x128xbf16>
    %16 = vector.shape_cast %15 : vector<1x1x1x8x128xbf16> to vector<8x128xbf16>
    %c40 = arith.constant 40 : index
    %c0_30 = arith.constant 0 : index
    %17 = vector.load %arg7[%c40, %c0_30] : memref<200x128xbf16, #tpu.memory_space<vmem>>, vector<8x128xbf16>
    tpu.vector_store %arg7[%c40, %c0_30], %16 {strides = array<i32>} : memref<200x128xbf16, #tpu.memory_space<vmem>>, vector<8x128xbf16>,
    %c0_31 = arith.constant 0 : index
    %c0_32 = arith.constant 0 : index
    %c0_33 = arith.constant 0 : index
    %c0_34 = arith.constant 0 : index
    %c13 = arith.constant 13 : index
    %18 = vector.load %arg3[%c0_31, %c0_32, %c0_33, %c0_34, %c13] : memref<1x1x1x8x256xbf16, #tpu.memory_space<vmem>>, vector<1x1x1x8x128xbf16>
    %19 = vector.shape_cast %18 : vector<1x1x1x8x128xbf16> to vector<8x128xbf16>
    %c48 = arith.constant 48 : index
    %c0_35 = arith.constant 0 : index
    %20 = vector.load %arg7[%c48, %c0_35] : memref<200x128xbf16, #tpu.memory_space<vmem>>, vector<8x128xbf16>
    tpu.vector_store %arg7[%c48, %c0_35], %19 {strides = array<i32>} : memref<200x128xbf16, #tpu.memory_space<vmem>>, vector<8x128xbf16>,
    %c0_36 = arith.constant 0 : index
    %c0_37 = arith.constant 0 : index
    %c0_38 = arith.constant 0 : index
    %c0_39 = arith.constant 0 : index
    %c14 = arith.constant 14 : index
    %21 = vector.load %arg3[%c0_36, %c0_37, %c0_38, %c0_39, %c14] : memref<1x1x1x8x256xbf16, #tpu.memory_space<vmem>>, vector<1x1x1x8x128xbf16>
    %22 = vector.shape_cast %21 : vector<1x1x1x8x128xbf16> to vector<8x128xbf16>
    %c56 = arith.constant 56 : index
    %c0_40 = arith.constant 0 : index
    %23 = vector.load %arg7[%c56, %c0_40] : memref<200x128xbf16, #tpu.memory_space<vmem>>, vector<8x128xbf16>
    tpu.vector_store %arg7[%c56, %c0_40], %22 {strides = array<i32>} : memref<200x128xbf16, #tpu.memory_space<vmem>>, vector<8x128xbf16>,
    %c0_41 = arith.constant 0 : index
    %c0_42 = arith.constant 0 : index
    %c0_43 = arith.constant 0 : index
    %c0_44 = arith.constant 0 : index
    %c15 = arith.constant 15 : index
    %24 = vector.load %arg3[%c0_41, %c0_42, %c0_43, %c0_44, %c15] : memref<1x1x1x8x256xbf16, #tpu.memory_space<vmem>>, vector<1x1x1x8x128xbf16>
    %25 = vector.shape_cast %24 : vector<1x1x1x8x128xbf16> to vector<8x128xbf16>
    %c64 = arith.constant 64 : index
    %c0_45 = arith.constant 0 : index
    %26 = vector.load %arg7[%c64, %c0_45] : memref<200x128xbf16, #tpu.memory_space<vmem>>, vector<8x128xbf16>
    tpu.vector_store %arg7[%c64, %c0_45], %25 {strides = array<i32>} : memref<200x128xbf16, #tpu.memory_space<vmem>>, vector<8x128xbf16>,
    %c0_46 = arith.constant 0 : index
    %c0_47 = arith.constant 0 : index
    %c0_48 = arith.constant 0 : index
    %c0_49 = arith.constant 0 : index
    %c16_50 = arith.constant 16 : index
    %27 = vector.load %arg3[%c0_46, %c0_47, %c0_48, %c0_49, %c16_50] : memref<1x1x1x8x256xbf16, #tpu.memory_space<vmem>>, vector<1x1x1x8x128xbf16>
    %28 = vector.shape_cast %27 : vector<1x1x1x8x128xbf16> to vector<8x128xbf16>
    %c72 = arith.constant 72 : index
    %c0_51 = arith.constant 0 : index
    %29 = vector.load %arg7[%c72, %c0_51] : memref<200x128xbf16, #tpu.memory_space<vmem>>, vector<8x128xbf16>
    tpu.vector_store %arg7[%c72, %c0_51], %28 {strides = array<i32>} : memref<200x128xbf16, #tpu.memory_space<vmem>>, vector<8x128xbf16>,
    %c0_52 = arith.constant 0 : index
    %c0_53 = arith.constant 0 : index
    %c0_54 = arith.constant 0 : index
    %c0_55 = arith.constant 0 : index
    %c24_56 = arith.constant 24 : index
    %30 = vector.load %arg3[%c0_52, %c0_53, %c0_54, %c0_55, %c24_56] : memref<1x1x1x8x256xbf16, #tpu.memory_space<vmem>>, vector<1x1x1x8x128xbf16>
    %31 = vector.shape_cast %30 : vector<1x1x1x8x128xbf16> to vector<8x128xbf16>
    %c80 = arith.constant 80 : index
    %c0_57 = arith.constant 0 : index
    %32 = vector.load %arg7[%c80, %c0_57] : memref<200x128xbf16, #tpu.memory_space<vmem>>, vector<8x128xbf16>
    tpu.vector_store %arg7[%c80, %c0_57], %31 {strides = array<i32>} : memref<200x128xbf16, #tpu.memory_space<vmem>>, vector<8x128xbf16>,
    %c0_58 = arith.constant 0 : index
    %c0_59 = arith.constant 0 : index
    %c0_60 = arith.constant 0 : index
    %c0_61 = arith.constant 0 : index
    %c25 = arith.constant 25 : index
    %33 = vector.load %arg3[%c0_58, %c0_59, %c0_60, %c0_61, %c25] : memref<1x1x1x8x256xbf16, #tpu.memory_space<vmem>>, vector<1x1x1x8x128xbf16>
    %34 = vector.shape_cast %33 : vector<1x1x1x8x128xbf16> to vector<8x128xbf16>
    %c88 = arith.constant 88 : index
    %c0_62 = arith.constant 0 : index
    %35 = vector.load %arg7[%c88, %c0_62] : memref<200x128xbf16, #tpu.memory_space<vmem>>, vector<8x128xbf16>
    tpu.vector_store %arg7[%c88, %c0_62], %34 {strides = array<i32>} : memref<200x128xbf16, #tpu.memory_space<vmem>>, vector<8x128xbf16>,
    %c0_63 = arith.constant 0 : index
    %c0_64 = arith.constant 0 : index
    %c0_65 = arith.constant 0 : index
    %c0_66 = arith.constant 0 : index
    %c26 = arith.constant 26 : index
    %36 = vector.load %arg3[%c0_63, %c0_64, %c0_65, %c0_66, %c26] : memref<1x1x1x8x256xbf16, #tpu.memory_space<vmem>>, vector<1x1x1x8x128xbf16>
    %37 = vector.shape_cast %36 : vector<1x1x1x8x128xbf16> to vector<8x128xbf16>
    %c96 = arith.constant 96 : index
    %c0_67 = arith.constant 0 : index
    %38 = vector.load %arg7[%c96, %c0_67] : memref<200x128xbf16, #tpu.memory_space<vmem>>, vector<8x128xbf16>
    tpu.vector_store %arg7[%c96, %c0_67], %37 {strides = array<i32>} : memref<200x128xbf16, #tpu.memory_space<vmem>>, vector<8x128xbf16>,
    %c0_68 = arith.constant 0 : index
    %c0_69 = arith.constant 0 : index
    %c0_70 = arith.constant 0 : index
    %c0_71 = arith.constant 0 : index
    %c27 = arith.constant 27 : index
    %39 = vector.load %arg3[%c0_68, %c0_69, %c0_70, %c0_71, %c27] : memref<1x1x1x8x256xbf16, #tpu.memory_space<vmem>>, vector<1x1x1x8x128xbf16>
    %40 = vector.shape_cast %39 : vector<1x1x1x8x128xbf16> to vector<8x128xbf16>
    %c104 = arith.constant 104 : index
    %c0_72 = arith.constant 0 : index
    %41 = vector.load %arg7[%c104, %c0_72] : memref<200x128xbf16, #tpu.memory_space<vmem>>, vector<8x128xbf16>
    tpu.vector_store %arg7[%c104, %c0_72], %40 {strides = array<i32>} : memref<200x128xbf16, #tpu.memory_space<vmem>>, vector<8x128xbf16>,
    %c0_73 = arith.constant 0 : index
    %c0_74 = arith.constant 0 : index
    %c0_75 = arith.constant 0 : index
    %c0_76 = arith.constant 0 : index
    %c28 = arith.constant 28 : index
    %42 = vector.load %arg3[%c0_73, %c0_74, %c0_75, %c0_76, %c28] : memref<1x1x1x8x256xbf16, #tpu.memory_space<vmem>>, vector<1x1x1x8x128xbf16>
    %43 = vector.shape_cast %42 : vector<1x1x1x8x128xbf16> to vector<8x128xbf16>
    %c112 = arith.constant 112 : index
    %c0_77 = arith.constant 0 : index
    %44 = vector.load %arg7[%c112, %c0_77] : memref<200x128xbf16, #tpu.memory_space<vmem>>, vector<8x128xbf16>
    tpu.vector_store %arg7[%c112, %c0_77], %43 {strides = array<i32>} : memref<200x128xbf16, #tpu.memory_space<vmem>>, vector<8x128xbf16>,
    %c0_78 = arith.constant 0 : index
    %c0_79 = arith.constant 0 : index
    %c0_80 = arith.constant 0 : index
    %c0_81 = arith.constant 0 : index
    %c36 = arith.constant 36 : index
    %45 = vector.load %arg3[%c0_78, %c0_79, %c0_80, %c0_81, %c36] : memref<1x1x1x8x256xbf16, #tpu.memory_space<vmem>>, vector<1x1x1x8x128xbf16>
    %46 = vector.shape_cast %45 : vector<1x1x1x8x128xbf16> to vector<8x128xbf16>
    %c120 = arith.constant 120 : index
    %c0_82 = arith.constant 0 : index
    %47 = vector.load %arg7[%c120, %c0_82] : memref<200x128xbf16, #tpu.memory_space<vmem>>, vector<8x128xbf16>
    tpu.vector_store %arg7[%c120, %c0_82], %46 {strides = array<i32>} : memref<200x128xbf16, #tpu.memory_space<vmem>>, vector<8x128xbf16>,
    %c0_83 = arith.constant 0 : index
    %c0_84 = arith.constant 0 : index
    %c0_85 = arith.constant 0 : index
    %c0_86 = arith.constant 0 : index
    %c37 = arith.constant 37 : index
    %48 = vector.load %arg3[%c0_83, %c0_84, %c0_85, %c0_86, %c37] : memref<1x1x1x8x256xbf16, #tpu.memory_space<vmem>>, vector<1x1x1x8x128xbf16>
    %49 = vector.shape_cast %48 : vector<1x1x1x8x128xbf16> to vector<8x128xbf16>
    %c128 = arith.constant 128 : index
    %c0_87 = arith.constant 0 : index
    %50 = vector.load %arg7[%c128, %c0_87] : memref<200x128xbf16, #tpu.memory_space<vmem>>, vector<8x128xbf16>
    tpu.vector_store %arg7[%c128, %c0_87], %49 {strides = array<i32>} : memref<200x128xbf16, #tpu.memory_space<vmem>>, vector<8x128xbf16>,
    %c0_88 = arith.constant 0 : index
    %c0_89 = arith.constant 0 : index
    %c0_90 = arith.constant 0 : index
    %c0_91 = arith.constant 0 : index
    %c38 = arith.constant 38 : index
    %51 = vector.load %arg3[%c0_88, %c0_89, %c0_90, %c0_91, %c38] : memref<1x1x1x8x256xbf16, #tpu.memory_space<vmem>>, vector<1x1x1x8x128xbf16>
    %52 = vector.shape_cast %51 : vector<1x1x1x8x128xbf16> to vector<8x128xbf16>
    %c136 = arith.constant 136 : index
    %c0_92 = arith.constant 0 : index
    %53 = vector.load %arg7[%c136, %c0_92] : memref<200x128xbf16, #tpu.memory_space<vmem>>, vector<8x128xbf16>
    tpu.vector_store %arg7[%c136, %c0_92], %52 {strides = array<i32>} : memref<200x128xbf16, #tpu.memory_space<vmem>>, vector<8x128xbf16>,
    %c0_93 = arith.constant 0 : index
    %c0_94 = arith.constant 0 : index
    %c0_95 = arith.constant 0 : index
    %c0_96 = arith.constant 0 : index
    %c39 = arith.constant 39 : index
    %54 = vector.load %arg3[%c0_93, %c0_94, %c0_95, %c0_96, %c39] : memref<1x1x1x8x256xbf16, #tpu.memory_space<vmem>>, vector<1x1x1x8x128xbf16>
    %55 = vector.shape_cast %54 : vector<1x1x1x8x128xbf16> to vector<8x128xbf16>
    %c144 = arith.constant 144 : index
    %c0_97 = arith.constant 0 : index
    %56 = vector.load %arg7[%c144, %c0_97] : memref<200x128xbf16, #tpu.memory_space<vmem>>, vector<8x128xbf16>
    tpu.vector_store %arg7[%c144, %c0_97], %55 {strides = array<i32>} : memref<200x128xbf16, #tpu.memory_space<vmem>>, vector<8x128xbf16>,
    %c0_98 = arith.constant 0 : index
    %c0_99 = arith.constant 0 : index
    %c0_100 = arith.constant 0 : index
    %c0_101 = arith.constant 0 : index
    %c40_102 = arith.constant 40 : index
    %57 = vector.load %arg3[%c0_98, %c0_99, %c0_100, %c0_101, %c40_102] : memref<1x1x1x8x256xbf16, #tpu.memory_space<vmem>>, vector<1x1x1x8x128xbf16>
    %58 = vector.shape_cast %57 : vector<1x1x1x8x128xbf16> to vector<8x128xbf16>
    %c152 = arith.constant 152 : index
    %c0_103 = arith.constant 0 : index
    %59 = vector.load %arg7[%c152, %c0_103] : memref<200x128xbf16, #tpu.memory_space<vmem>>, vector<8x128xbf16>
    tpu.vector_store %arg7[%c152, %c0_103], %58 {strides = array<i32>} : memref<200x128xbf16, #tpu.memory_space<vmem>>, vector<8x128xbf16>,
    %c0_104 = arith.constant 0 : index
    %c0_105 = arith.constant 0 : index
    %c0_106 = arith.constant 0 : index
    %c0_107 = arith.constant 0 : index
    %c48_108 = arith.constant 48 : index
    %60 = vector.load %arg3[%c0_104, %c0_105, %c0_106, %c0_107, %c48_108] : memref<1x1x1x8x256xbf16, #tpu.memory_space<vmem>>, vector<1x1x1x8x128xbf16>
    %61 = vector.shape_cast %60 : vector<1x1x1x8x128xbf16> to vector<8x128xbf16>
    %c160 = arith.constant 160 : index
    %c0_109 = arith.constant 0 : index
    %62 = vector.load %arg7[%c160, %c0_109] : memref<200x128xbf16, #tpu.memory_space<vmem>>, vector<8x128xbf16>
    tpu.vector_store %arg7[%c160, %c0_109], %61 {strides = array<i32>} : memref<200x128xbf16, #tpu.memory_space<vmem>>, vector<8x128xbf16>,
    %c0_110 = arith.constant 0 : index
    %c0_111 = arith.constant 0 : index
    %c0_112 = arith.constant 0 : index
    %c0_113 = arith.constant 0 : index
    %c49 = arith.constant 49 : index
    %63 = vector.load %arg3[%c0_110, %c0_111, %c0_112, %c0_113, %c49] : memref<1x1x1x8x256xbf16, #tpu.memory_space<vmem>>, vector<1x1x1x8x128xbf16>
    %64 = vector.shape_cast %63 : vector<1x1x1x8x128xbf16> to vector<8x128xbf16>
    %c168 = arith.constant 168 : index
    %c0_114 = arith.constant 0 : index
    %65 = vector.load %arg7[%c168, %c0_114] : memref<200x128xbf16, #tpu.memory_space<vmem>>, vector<8x128xbf16>
    tpu.vector_store %arg7[%c168, %c0_114], %64 {strides = array<i32>} : memref<200x128xbf16, #tpu.memory_space<vmem>>, vector<8x128xbf16>,
    %c0_115 = arith.constant 0 : index
    %c0_116 = arith.constant 0 : index
    %c0_117 = arith.constant 0 : index
    %c0_118 = arith.constant 0 : index
    %c50 = arith.constant 50 : index
    %66 = vector.load %arg3[%c0_115, %c0_116, %c0_117, %c0_118, %c50] : memref<1x1x1x8x256xbf16, #tpu.memory_space<vmem>>, vector<1x1x1x8x128xbf16>
    %67 = vector.shape_cast %66 : vector<1x1x1x8x128xbf16> to vector<8x128xbf16>
    %c176 = arith.constant 176 : index
    %c0_119 = arith.constant 0 : index
    %68 = vector.load %arg7[%c176, %c0_119] : memref<200x128xbf16, #tpu.memory_space<vmem>>, vector<8x128xbf16>
    tpu.vector_store %arg7[%c176, %c0_119], %67 {strides = array<i32>} : memref<200x128xbf16, #tpu.memory_space<vmem>>, vector<8x128xbf16>,
    %c0_120 = arith.constant 0 : index
    %c0_121 = arith.constant 0 : index
    %c0_122 = arith.constant 0 : index
    %c0_123 = arith.constant 0 : index
    %c51 = arith.constant 51 : index
    %69 = vector.load %arg3[%c0_120, %c0_121, %c0_122, %c0_123, %c51] : memref<1x1x1x8x256xbf16, #tpu.memory_space<vmem>>, vector<1x1x1x8x128xbf16>
    %70 = vector.shape_cast %69 : vector<1x1x1x8x128xbf16> to vector<8x128xbf16>
    %c184 = arith.constant 184 : index
    %c0_124 = arith.constant 0 : index
    %71 = vector.load %arg7[%c184, %c0_124] : memref<200x128xbf16, #tpu.memory_space<vmem>>, vector<8x128xbf16>
    tpu.vector_store %arg7[%c184, %c0_124], %70 {strides = array<i32>} : memref<200x128xbf16, #tpu.memory_space<vmem>>, vector<8x128xbf16>,
    %c0_125 = arith.constant 0 : index
    %c0_126 = arith.constant 0 : index
    %c0_127 = arith.constant 0 : index
    %c0_128 = arith.constant 0 : index
    %c52 = arith.constant 52 : index
    %72 = vector.load %arg3[%c0_125, %c0_126, %c0_127, %c0_128, %c52] : memref<1x1x1x8x256xbf16, #tpu.memory_space<vmem>>, vector<1x1x1x8x128xbf16>
    %73 = vector.shape_cast %72 : vector<1x1x1x8x128xbf16> to vector<8x128xbf16>
    %c192 = arith.constant 192 : index
    %c0_129 = arith.constant 0 : index
    %74 = vector.load %arg7[%c192, %c0_129] : memref<200x128xbf16, #tpu.memory_space<vmem>>, vector<8x128xbf16>
    tpu.vector_store %arg7[%c192, %c0_129], %73 {strides = array<i32>} : memref<200x128xbf16, #tpu.memory_space<vmem>>, vector<8x128xbf16>,
    %c0_130 = arith.constant 0 : index
    %c0_131 = arith.constant 0 : index
    %75 = vector.load %arg4[%c0_130, %c0_131] : memref<8x200xbf16, #tpu.memory_space<vmem>>, vector<8x200xbf16>
    %c0_132 = arith.constant 0 : index
    %c0_133 = arith.constant 0 : index
    %76 = vector.load %arg7[%c0_132, %c0_133] : memref<200x128xbf16, #tpu.memory_space<vmem>>, vector<200x128xbf16>
    %cst = arith.constant dense<0.000000e+00> : vector<8x128xf32>
    %77 = tpu.matmul %75, %76, %cst {dimension_numbers = #tpu.dot_dimension_numbers<[1], [0], [0], [1], [0, 0, 1, 1], [], []>} : vector<8x200xbf16>, vector<200x128xbf16>, vector<8x128xf32> -> vector<8x128xf32>
    %c0_134 = arith.constant 0 : index
    %c0_135 = arith.constant 0 : index
    %78 = vector.load %arg5[%c0_134, %c0_135] : memref<8x1xf32, #tpu.memory_space<vmem>>, vector<8x1xf32>
    %79 = vector.broadcast %78 : vector<8x1xf32> to vector<8x128xf32>
    %80 = arith.addf %77, %79 : vector<8x128xf32>
    %c0_136 = arith.constant 0 : index
    %c0_137 = arith.constant 0 : index
    %c0_138 = arith.constant 0 : index
    %c0_139 = arith.constant 0 : index
    %c0_140 = arith.constant 0 : index
    %81 = vector.load %arg6[%c0_136, %c0_137, %c0_138, %c0_139, %c0_140] : memref<1x1x1x8x128xf32, #tpu.memory_space<vmem>>, vector<1x1x1x8x128xf32>
    %82 = vector.shape_cast %81 : vector<1x1x1x8x128xf32> to vector<8x128xf32>
    %83 = vector.shape_cast %80 : vector<8x128xf32> to vector<1x1x1x8x128xf32>
    tpu.vector_store %arg6[%c0_136, %c0_137, %c0_138, %c0_139, %c0_140], %83 {strides = array<i32>} : memref<1x1x1x8x128xf32, #tpu.memory_space<vmem>>, vector<1x1x1x8x128xf32>,
    return
  }
  func.func @transform_0(%arg0: i32, %arg1: i32, %arg2: i32) -> (i32, i32, i32, i32, i32) {
    %c0_i32 = arith.constant 0 : i32
    %0 = arith.addi %arg1, %c0_i32 : i32
    %c0_i32_0 = arith.constant 0 : i32
    %c0_i32_1 = arith.constant 0 : i32
    %c0_i32_2 = arith.constant 0 : i32
    return %arg0, %0, %arg2, %c0_i32_0, %c0_i32_1 : i32, i32, i32, i32, i32
  }
  func.func @transform_1(%arg0: i32, %arg1: i32, %arg2: i32) -> (i32, i32) {
    %c0_i32 = arith.constant 0 : i32
    %c0_i32_0 = arith.constant 0 : i32
    %c0_i32_1 = arith.constant 0 : i32
    return %c0_i32, %c0_i32_0 : i32, i32
  }
  func.func @transform_2(%arg0: i32, %arg1: i32, %arg2: i32) -> (i32, i32) {
    %c0_i32 = arith.constant 0 : i32
    %c0_i32_0 = arith.constant 0 : i32
    %c0_i32_1 = arith.constant 0 : i32
    return %c0_i32, %c0_i32_0 : i32, i32
  }
  func.func @transform_3(%arg0: i32, %arg1: i32, %arg2: i32) -> (i32, i32, i32, i32, i32) {
    %c0_i32 = arith.constant 0 : i32
    %c0_i32_0 = arith.constant 0 : i32
    %c0_i32_1 = arith.constant 0 : i32
    return %arg0, %arg1, %arg2, %c0_i32, %c0_i32_0 : i32, i32, i32, i32, i32
  }
}

</mosaic_0001>

<bundles_post_ra>
// kernel: tpu_custom_call.1
= control target key start
LH: loop header
LB: loop body
LE: loop exit
PB: predicated region body
PF: predicated region fallthrough
CT: control target
= control target key end

     0   :  { %8 = vsyncpa [#allocation4], 0  ;;  %s1260_s0 = inlined_call_operand.hbm [shape: bf16[2,4,1,8,256], index: 0, kind: input, shape index: {}]   ;;  %s1261_s1 = inlined_call_operand.vmem [shape: bf16[8,200], index: 1, kind: input, shape index: {}]   ;;  %s1262_s2 = inlined_call_operand.vmem [shape: f32[8,1], index: 2, kind: input, shape index: {}]   ;;  %s1263_s3 = inlined_call_operand.hbm [shape: f32[2,4,1,8,128], index: 3, kind: output, shape index: {}]  }
   0x1   :  { %10 = vsyncpa [#allocation4 + $0x1], 0 }
   0x2   :  { %11 = vsyncpa [#allocation5], 0 }
   0x3   :  { %13 = vsyncpa [#allocation5 + $0x1], 0  ;;  %s1036_s12 = smov 0   ;;  %s1038_s13 = smov 0  }
   0x4   :  { %s1040_s14 = smov 0   ;;  %s1042_s15 = smov 0  }
   0x5   :  { %s1044_s16 = smov 0   ;;  %s1046_s17 = smov 0  }
   0x6   :  { %s1048_s18 = smov 0   ;;  %s1050_s19 = smov 0  }
   0x7 LB: > { %s708_s20 = sadd.s32 4294967295, %s987_s19   ;;  %s709_s21 = sadd.s32 4294967294, %s987_s19   ;;  %s987_s19 = sphi %s1050_s19, %s19_s19   ;;  %s983_s18 = sphi %s1048_s18, %s1280_s18   ;;  %s979_s17 = sphi %s1046_s17, %s1279_s17   ;;  %s975_s16 = sphi %s1044_s16, %s1278_s16   ;;  %s971_s15 = sphi %s1042_s15, %s1277_s15   ;;  %s967_s14 = sphi %s1040_s14, %s1276_s14   ;;  %s963_s13 = sphi %s1038_s13, %s1275_s13   ;;  %s959_s12 = sphi %s1036_s12, %s1274_s12  }
   0x8   : > { %s34_s22 = sadd.s32 1, %s979_s17  ;;  %s38_s23 = sadd.s32 1, %s983_s18 }
   0x9   : > { %p36_p0 = scmp.ge.s32.totalorder %s34_s22, 4  ;;  %s49_s24 = sadd.s32 1, %s967_s14 }
   0xa   : > { %p56_p1 = scmp.ne.s32.totalorder %s967_s14, %s963_s13  ;;  %p57_p2 = scmp.eq.s32.totalorder %s987_s19, 0 }
   0xb   : > { %s1282_s22 = smov (%p36_p0, %s34_s22), 0  ;;  %s1284_s23 = smov (!%p36_p0, %s38_s23), %s983_s18 }
   0xc   : > { %s43_s25 = ssub.s32 %s979_s17, %s1282_s22  ;;  %p1089_p3 = por %p57_p2, %p56_p1 }
   0xd   : > { %p40_p4 = scmp.ge.s32.totalorder %s1284_s23, 2  ;;  %p62_p5 = scmp.ne.s32.totalorder %s963_s13, %s959_s12 }
   0xe   : > { %p63_p6 = scmp.eq.s32.totalorder %s708_s20, 0  ;;  %p132_p7 = scmp.eq.s32.totalorder %s708_s20, 7 }
   0xf   : > { %s1286_s23 = smov (%p40_p4, %s1284_s23), 0  ;;  %p138_p10 = scmp.eq.s32.totalorder %s709_s21, 7 }
  0x10   : > { %p1097_p8 = por %p63_p6, %p62_p5  ;;  %p1101_p9 = por %p132_p7, %p56_p1 }
  0x11   : > { %s42_s29 = ssub.s32 %s983_s18, %s1286_s23  ;;  %p1107_p12 = por %p138_p10, %p62_p5 }
  0x12   : > { %s1267_s28 = scalar_select %p1101_p9, 1, 0 }
  0x13   : > { %s44_s30 = sor.u32 %s43_s25, %s42_s29  ;;  %p752_p13 = scmp.lt.s32.totalorder %s987_s19, 8 }
  0x14   : > { %p47_p11 = scmp.eq.s32.totalorder %s44_s30, 0  ;;  %s164_s5 = sand.u32 1, %s967_s14  }
  0x15   : > { %s1268_s4 = scalar_select %p1107_p12, 1, 0 }
  0x16   : > { %s1114_s6 = scalar_select %p47_p11, %s967_s14, %s49_s24  }
  0x17   : > { %s712_s7 = sshll.u32 %s164_s5, 3  ;;  %s713_s8 = sshll.u32 %s979_s17, 1 }
  0x18   : > { %s714_s9 = sshll.u32 %s983_s18, 3  ;;  %s168_s10 = scalar_lea.vmem [#allocation3], %s712_s7 }
  0x19   : > { %s180_s11 = sshll.u32 %s168_s10, 4  ;;  %s176_s20 = sadd.s32 %s714_s9, %s713_s8  ;;  %s1118_s11 = int_to_ptr.vmem [resolvable:$true] %s180_s11 }
  0x1a   : > { %s715_s21 = sshll.u32 %s176_s20, 6  ;;  %p1122_p0 = pnand %p752_p13, %p1089_p3 }
  0x1b   : > { %s1129_s24 = scalar_lea.hbm %s1260_s0, %s715_s21  ;;  %s165_s7 = scalar_lea.sflag [#allocation4], %s164_s5 }
  0x1c   : > { %s859_s8 = scalar_lea.hbm %s1129_s24, 128  ;;  %p861_p3 = pneg %p1122_p0 }
  0x1d   : > { %p860_p4 = scmp.ne.s32.totalorder %s1129_s24, %s859_s8  ;;  %s864_s10 = scalar_lea.hbm %s1260_s0, 1024 }
  0x1e   : > { %p865_p7 = scmp.lt.u32.totalorder %s1129_s24, %s1260_s0  ;;  %p866_p10 = scmp.lt.u32.totalorder %s864_s10, %s859_s8 }
  0x1f   : > { %p862_p5 = pnand %p861_p3, %p860_p4  ;;  %p868_p13 = scmp.lt.u32.totalorder %s859_s8, %s1129_s24 }
  0x20   : > { %p867_p11 = por %p866_p10, %p865_p7 }
  0x21   : > { %p863_p6 = pneg %p862_p5 }
  0x22   : > { %p869_p1 = por %p868_p13, %p867_p11 }
  0x24   : > { %p870_p2 = pnand %p869_p1, %p863_p6 }
  0x26   : > { %873 = shalt.err (!%p870_p2)
}
  0x27   : > { %s874_s5 = scalar_lea.vmem %s1118_s11, 128  ;;  %s989_s29 = smov [#allocation3]  }
  0x28   : > { %p875_p4 = scmp.ne.s32.totalorder %s1118_s11, %s874_s5  ;;  %s879_s30 = sshll.u32 %s989_s29, 4  ;;  %s880_s30 = int_to_ptr.vmem [resolvable:$false] %s879_s30 }
  0x29   : > { %s881_s26 = scalar_lea.vmem %s880_s30, 256  ;;  %p882_p9 = scmp.lt.s32.totalorder %s1118_s11, %s880_s30 }
  0x2a   : > { %p877_p5 = pnand %p875_p4, %p861_p3  ;;  %p883_p7 = scmp.lt.s32.totalorder %s881_s26, %s874_s5 }
  0x2c   : > { %p878_p12 = pneg %p877_p5  ;;  %p884_p10 = por %p883_p7, %p882_p9 }
  0x2e   : > { %p885_p11 = pnand %p884_p10, %p878_p12 }
  0x30   : > { %888 = shalt.err (!%p885_p11)
}
  0x31   : > { %747 = dma.hbm_to_vmem [thread:$0]  (!%p1122_p0), %s1129_s24, 128, %s1118_s11, %s165_s7  }
  0x32   : > { %p1270_p1 = scmp.lt.s32.totalorder %s987_s19, 9  ;;  %p1271_p2 = scmp.ge.s32.totalorder %s987_s19, 1 }
  0x34   : > { %p186_p3 = pnand %p1271_p2, %p1270_p1 }
  0x35   : > { %s1163_s8 = sand.u32 (!%p186_p3), 1, %s963_s13  }
  0x36   : > { %189 = sbr.rel (%p186_p3) target bundleno = 469 (0x1d5), region = 32  ;;  %s717_s9 = sshll.u32 (!%p186_p3), %s1163_s8, 3 }
  0x37   : > { %s192_s10 = scalar_lea.sflag (!%p186_p3), [#allocation4], %s1163_s8  ;;  %s195_s25 = scalar_lea.vmem (!%p186_p3), [#allocation3], %s717_s9 }
  0x3d   : > { %950 = dma.done.wait (%p1097_p8), %s192_s10, 128  }
  0x3e   : > { %952 = vsyncadd (%p1097_p8), %s192_s10, 4294967168  ;;  %v990_v0 = vmov 0   ;;  %v221_v1 = vld [vmem:[%s195_s25] sm:$0xff]  ;;  %s991_s11 = smov 127   ;;  %s992_s24 = smov 125   ;;  %vm550_vm0 = vcmask 588800  }
  0x3f   : > { %558 = vmatprep.subr.bf16.mxu0 %v990_v0  ;;  %843 = vset.pattern.permute.xlu0 %v990_v0  ;;  %v219_v2 = vld [vmem:[%s195_s25] sm:$0xf]  ;;  %s993_s7 = smov 126   ;;  %s994_s20 = smov 124   ;;  %vm226_vm1 = vcmask 1039360   ;;  %vm244_vm2 = vcmask 1022976  }
  0x40   : > { %223 = vrot.lane.b32.xlu0 %v221_v1, %s991_s11  ;;  %241 = vrot.lane.b32.xlu1 %v221_v1, %s992_s24  ;;  %220 = vst [vmem:[#allocation2] sm:$0xf] %v219_v2  ;;  %s995_s21 = smov 116   ;;  %s996_s27 = smov 115   ;;  %v1178_v3 = vld [vmem:[%s1261_s1] sm:$0xff]  ;;  %vm235_vm3 = vcmask 1031168  }
  0x41   : > { %s997_s5 = smov 114   ;;  %s998_s29 = smov 113   ;;  %v720_v4 = vcombine.high %v1178_v3, %v1178_v3  ;;  %v463_v5 = vld [vmem:[%s1262_s2] sm:$0xff]  ;;  %vm253_vm4 = vcmask 1014784   ;;  %vm262_vm5 = vcmask 949248   ;;  %vm271_vm6 = vcmask 941056  }
  0x42   : > { %s999_s30 = smov 112   ;;  %s1000_s26 = smov 104   ;;  %vm280_vm7 = vcmask 932864   ;;  %vm289_vm8 = vcmask 924672   ;;  %vm298_vm9 = vcmask 916480   ;;  %vm307_vm10 = vcmask 850944  }
  0x43   : > { %s1001_s10 = smov 103   ;;  %s1002_s25 = smov 102   ;;  %734 = vmatprep.mubr.msk.bf16.mxu0 %vm550_vm0, %v720_v4  ;;  %vm316_vm11 = vcmask 842752   ;;  %vm325_vm12 = vcmask 834560   ;;  %vm334_vm13 = vcmask 826368   ;;  %vm343_vm14 = vcmask 818176  }
  0x44   : > { %232 = vrot.lane.b32.xlu0 %v221_v1, %s993_s7  ;;  %250 = vrot.lane.b32.xlu1 %v221_v1, %s994_s20  ;;  %s1003_s11 = smov 101   ;;  %s1004_s24 = smov 100   ;;  %vm352_vm15 = vcmask 752640   ;;  %vm361_vm0 = vcmask 744448  }
  0x45   : > { %s1005_s7 = smov 92   ;;  %s1006_s20 = smov 91  }
  0x46   : > { %p1272_p9 = scmp.ne.s32.totalorder %s1267_s28, 0 }
  0x48   : > { %259 = vrot.lane.b32.xlu0 %v221_v1, %s995_s21  ;;  %268 = vrot.lane.b32.xlu1 %v221_v1, %s996_s27  ;;  %s1007_s21 = smov 90   ;;  %s1008_s27 = smov 89  }
  0x4c   : > { %277 = vrot.lane.b32.xlu0 %v221_v1, %s997_s5  ;;  %286 = vrot.lane.b32.xlu1 %v221_v1, %s998_s29  ;;  %s1009_s5 = smov 88   ;;  %s1010_s29 = smov 80  }
  0x50   : > { %295 = vrot.lane.b32.xlu0 %v221_v1, %s999_s30  ;;  %304 = vrot.lane.b32.xlu1 %v221_v1, %s1000_s26  ;;  %s1011_s30 = smov 79   ;;  %s1012_s26 = smov 78  }
  0x54   : > { %313 = vrot.lane.b32.xlu0 %v221_v1, %s1001_s10  ;;  %322 = vrot.lane.b32.xlu1 %v221_v1, %s1002_s25  ;;  %s1013_s10 = smov 77   ;;  %s1014_s25 = smov 76  }
  0x58   : > { %331 = vrot.lane.b32.xlu0 %v221_v1, %s1003_s11  ;;  %340 = vrot.lane.b32.xlu1 %v221_v1, %s1004_s24 }
  0x5c   : > { %349 = vrot.lane.b32.xlu0 %v221_v1, %s1005_s7  ;;  %358 = vrot.lane.b32.xlu1 %v221_v1, %s1006_s20 }
  0x60   : > { %367 = vrot.lane.b32.xlu0 %v221_v1, %s1007_s21  ;;  %376 = vrot.lane.b32.xlu1 %v221_v1, %s1008_s27  ;;  %s736_s21 = sshll.u32 %s975_s16, 2 }
  0x61   : > { %s612_s27 = sadd.s32 %s971_s15, %s736_s21  ;;  %s600_s15 = scalar_lea.sflag [#allocation5], %s1163_s8 }
  0x64   : > { %385 = vrot.lane.b32.xlu0 %v221_v1, %s1009_s5  ;;  %394 = vrot.lane.b32.xlu1 %v221_v1, %s1010_s29  ;;  %s737_s5 = sshll.u32 %s612_s27, 7  ;;  %s217_s29 = scalar_lea.vmem [#allocation6], %s717_s9 }
  0x65   : > { %s1015_s9 = smov [#allocation6]  }
  0x66   : > { %s893_s11 = sshll.u32 %s1015_s9, 4  ;;  %s894_s11 = int_to_ptr.vmem [resolvable:$false] %s893_s11 }
  0x67   : > { %s895_s24 = scalar_lea.vmem %s894_s11, 256 }
  0x68   : > { %403 = vrot.lane.b32.xlu0 %v221_v1, %s1011_s30  ;;  %412 = vrot.lane.b32.xlu1 %v221_v1, %s1012_s26  ;;  %s616_s30 = sshll.u32 %s217_s29, 4  ;;  %s1208_s30 = int_to_ptr.vmem [resolvable:$true] %s616_s30 }
  0x69   : > { %s889_s16 = scalar_lea.vmem %s1208_s30, 128  ;;  %p896_p6 = scmp.lt.s32.totalorder %s1208_s30, %s894_s11 }
  0x6a   : > { %p890_p8 = scmp.ne.s32.totalorder %s1208_s30, %s889_s16  ;;  %p897_p13 = scmp.lt.s32.totalorder %s895_s24, %s889_s16 }
  0x6c   : > { %421 = vrot.lane.b32.xlu0 %v221_v1, %s1013_s10  ;;  %430 = vrot.lane.b32.xlu1 %v221_v1, %s1014_s25  ;;  %s1206_s25 = scalar_lea.hbm %s1263_s3, %s737_s5  ;;  %p891_p12 = pnand %p890_p8, %p1272_p9 }
  0x6d   : > { %p898_p4 = por %p897_p13, %p896_p6 }
  0x6e   : > { %p892_p0 = pneg %p891_p12 }
  0x70   : > { %466 = vperm.xlu0 %843, %v463_v5   ;;  %p899_p5 = pnand %p898_p4, %p892_p0 }
  0xb2   : > { %v224_v6 = vpop.permute.xlu0 %223  ;;  %v242_v7 = vpop.permute.xlu1 %241 }
  0xb3   : > { %v225_v8 = vrot.slane %v224_v6, 4  ;;  %v243_v9 = vrot.slane %v242_v7, 4 }
  0xb5   : > { %v227_v10 = vsel %vm226_vm1, %v224_v6, %v225_v8  ;;  %v245_v11 = vsel %vm244_vm2, %v242_v7, %v243_v9  ;;  %vm370_vm1 = vcmask 736256   ;;  %vm379_vm2 = vcmask 728064  }
  0xb6   : > { %229 = vst [vmem:[#allocation2 + $0x4] sm:$0xf] %v227_v10  ;;  %247 = vst [vmem:[#allocation2 + $0xc] sm:$0xf] %v245_v11  ;;  %v233_v12 = vpop.permute.xlu0 %232  ;;  %v251_v13 = vpop.permute.xlu1 %250 }
  0xb7   : > { %v234_v14 = vrot.slane %v233_v12, 4  ;;  %v252_v15 = vrot.slane %v251_v13, 4 }
  0xb9   : > { %v236_v16 = vsel %vm235_vm3, %v233_v12, %v234_v14  ;;  %v254_v17 = vsel %vm253_vm4, %v251_v13, %v252_v15  ;;  %vm388_vm3 = vcmask 719872   ;;  %vm397_vm4 = vcmask 654336  }
  0xba   : > { %238 = vst [vmem:[#allocation2 + $0x8] sm:$0xf] %v236_v16  ;;  %256 = vst [vmem:[#allocation2 + $0x10] sm:$0xf] %v254_v17  ;;  %v260_v18 = vpop.permute.xlu0 %259  ;;  %v269_v19 = vpop.permute.xlu1 %268 }
  0xbb   : > { %v261_v20 = vrot.slane %v260_v18, 4  ;;  %v270_v21 = vrot.slane %v269_v19, 4 }
  0xbd   : > { %v263_v22 = vsel %vm262_vm5, %v260_v18, %v261_v20  ;;  %v272_v23 = vsel %vm271_vm6, %v269_v19, %v270_v21  ;;  %v844_v24 = vld [vmem:[#allocation2] sm:$0xff]   ;;  %vm406_vm5 = vcmask 646144   ;;  %vm415_vm6 = vcmask 637952  }
  0xbe   : > { %265 = vst [vmem:[#allocation2 + $0x14] sm:$0xf] %v263_v22  ;;  %274 = vst [vmem:[#allocation2 + $0x18] sm:$0xf] %v272_v23  ;;  %v278_v25 = vpop.permute.xlu0 %277  ;;  %v287_v26 = vpop.permute.xlu1 %286  ;;  %559 = vmatpush1.bf16.msra.mxu0 %v844_v24 }
  0xbf   : > { %v279_v27 = vrot.slane %v278_v25, 4  ;;  %v288_v28 = vrot.slane %v287_v26, 4  ;;  %560 = vmatprep.subr.bf16.mxu0 %v990_v0 }
  0xc1   : > { %v281_v29 = vsel %vm280_vm7, %v278_v25, %v279_v27  ;;  %v290_v30 = vsel %vm289_vm8, %v287_v26, %v288_v28  ;;  %v845_v31 = vld [vmem:[#allocation2 + $0x8] sm:$0xff]   ;;  %vm424_vm7 = vcmask 629760   ;;  %vm433_vm8 = vcmask 621568  }
  0xc2   : > { %283 = vst [vmem:[#allocation2 + $0x1c] sm:$0xf] %v281_v29  ;;  %292 = vst [vmem:[#allocation2 + $0x20] sm:$0xf] %v290_v30  ;;  %v296_v32 = vpop.permute.xlu0 %295  ;;  %v305_v33 = vpop.permute.xlu1 %304  ;;  %561 = vmatpush1.bf16.msra.mxu0 %v845_v31  ;;  %v719_v30 = vcombine.low %v1178_v3, %v1178_v3 }
  0xc3   : > { %v297_v34 = vrot.slane %v296_v32, 4  ;;  %v306_v35 = vrot.slane %v305_v33, 4  ;;  %562 = vmatprep.subr.bf16.mxu0 %v990_v0 }
  0xc5   : > { %v299_v36 = vsel %vm298_vm9, %v296_v32, %v297_v34  ;;  %v308_v37 = vsel %vm307_vm10, %v305_v33, %v306_v35  ;;  %v846_v38 = vld [vmem:[#allocation2 + $0x10] sm:$0xff]   ;;  %vm554_vm9 = vcmask 1043456  }
  0xc6   : > { %301 = vst [vmem:[#allocation2 + $0x24] sm:$0xf] %v299_v36  ;;  %310 = vst [vmem:[#allocation2 + $0x28] sm:$0xf] %v308_v37  ;;  %v314_v39 = vpop.permute.xlu0 %313  ;;  %v323_v40 = vpop.permute.xlu1 %322  ;;  %563 = vmatpush1.bf16.msra.mxu0 %v846_v38 }
  0xc7   : > { %v315_v41 = vrot.slane %v314_v39, 4  ;;  %v324_v42 = vrot.slane %v323_v40, 4  ;;  %564 = vmatprep.subr.bf16.mxu0 %v990_v0 }
  0xc9   : > { %v317_v43 = vsel %vm316_vm11, %v314_v39, %v315_v41  ;;  %v326_v44 = vsel %vm325_vm12, %v323_v40, %v324_v42  ;;  %v847_v45 = vld [vmem:[#allocation2 + $0x18] sm:$0xff]  }
  0xca   : > { %319 = vst [vmem:[#allocation2 + $0x2c] sm:$0xf] %v317_v43  ;;  %328 = vst [vmem:[#allocation2 + $0x30] sm:$0xf] %v326_v44  ;;  %v332_v46 = vpop.permute.xlu0 %331  ;;  %v341_v47 = vpop.permute.xlu1 %340  ;;  %565 = vmatpush1.bf16.msra.mxu0 %v847_v45 }
  0xcb   : > { %v333_v48 = vrot.slane %v332_v46, 4  ;;  %v342_v49 = vrot.slane %v341_v47, 4  ;;  %566 = vmatprep.subr.bf16.mxu0 %v990_v0 }
  0xcd   : > { %v335_v50 = vsel %vm334_vm13, %v332_v46, %v333_v48  ;;  %v344_v51 = vsel %vm343_vm14, %v341_v47, %v342_v49  ;;  %v848_v52 = vld [vmem:[#allocation2 + $0x20] sm:$0xff]  }
  0xce   : > { %337 = vst [vmem:[#allocation2 + $0x34] sm:$0xf] %v335_v50  ;;  %346 = vst [vmem:[#allocation2 + $0x38] sm:$0xf] %v344_v51  ;;  %v350_v53 = vpop.permute.xlu0 %349  ;;  %v359_v54 = vpop.permute.xlu1 %358  ;;  %567 = vmatpush1.bf16.msra.mxu0 %v848_v52 }
  0xcf   : > { %v351_v55 = vrot.slane %v350_v53, 4  ;;  %v360_v56 = vrot.slane %v359_v54, 4  ;;  %568 = vmatprep.subr.bf16.mxu0 %v990_v0 }
  0xd1   : > { %v353_v57 = vsel %vm352_vm15, %v350_v53, %v351_v55  ;;  %v362_v58 = vsel %vm361_vm0, %v359_v54, %v360_v56  ;;  %v849_v59 = vld [vmem:[#allocation2 + $0x28] sm:$0xff]  }
  0xd2   : > { %355 = vst [vmem:[#allocation2 + $0x3c] sm:$0xf] %v353_v57  ;;  %364 = vst [vmem:[#allocation2 + $0x40] sm:$0xf] %v362_v58  ;;  %v368_v60 = vpop.permute.xlu0 %367  ;;  %v377_v61 = vpop.permute.xlu1 %376  ;;  %569 = vmatpush1.bf16.msra.mxu0 %v849_v59 }
  0xd3   : > { %v369_v62 = vrot.slane %v368_v60, 4  ;;  %v378_v63 = vrot.slane %v377_v61, 4  ;;  %570 = vmatprep.subr.bf16.mxu0 %v990_v0 }
  0xd5   : > { %v371_v1 = vsel %vm370_vm1, %v368_v60, %v369_v62  ;;  %v380_v2 = vsel %vm379_vm2, %v377_v61, %v378_v63  ;;  %v850_v4 = vld [vmem:[#allocation2 + $0x30] sm:$0xff]  }
  0xd6   : > { %373 = vst [vmem:[#allocation2 + $0x44] sm:$0xf] %v371_v1  ;;  %382 = vst [vmem:[#allocation2 + $0x48] sm:$0xf] %v380_v2  ;;  %v386_v5 = vpop.permute.xlu0 %385  ;;  %v395_v6 = vpop.permute.xlu1 %394  ;;  %571 = vmatpush1.bf16.msra.mxu0 %v850_v4 }
  0xd7   : > { %v387_v7 = vrot.slane %v386_v5, 4  ;;  %v396_v8 = vrot.slane %v395_v6, 4  ;;  %572 = vmatprep.subr.bf16.mxu0 %v990_v0 }
  0xd9   : > { %v389_v9 = vsel %vm388_vm3, %v386_v5, %v387_v7  ;;  %v398_v10 = vsel %vm397_vm4, %v395_v6, %v396_v8  ;;  %v851_v11 = vld [vmem:[#allocation2 + $0x38] sm:$0xff]  }
  0xda   : > { %391 = vst [vmem:[#allocation2 + $0x4c] sm:$0xf] %v389_v9  ;;  %400 = vst [vmem:[#allocation2 + $0x50] sm:$0xf] %v398_v10  ;;  %v404_v12 = vpop.permute.xlu0 %403  ;;  %v413_v13 = vpop.permute.xlu1 %412  ;;  %573 = vmatpush1.bf16.msra.mxu0 %v851_v11 }
  0xdb   : > { %v405_v14 = vrot.slane %v404_v12, 4  ;;  %v414_v15 = vrot.slane %v413_v13, 4  ;;  %574 = vmatprep.subr.bf16.mxu0 %v990_v0 }
  0xdd   : > { %v407_v16 = vsel %vm406_vm5, %v404_v12, %v405_v14  ;;  %v416_v17 = vsel %vm415_vm6, %v413_v13, %v414_v15  ;;  %v852_v18 = vld [vmem:[#allocation2 + $0x40] sm:$0xff]  }
  0xde   : > { %409 = vst [vmem:[#allocation2 + $0x54] sm:$0xf] %v407_v16  ;;  %418 = vst [vmem:[#allocation2 + $0x58] sm:$0xf] %v416_v17  ;;  %v422_v19 = vpop.permute.xlu0 %421  ;;  %v431_v20 = vpop.permute.xlu1 %430  ;;  %575 = vmatpush1.bf16.msra.mxu0 %v852_v18 }
  0xdf   : > { %v423_v21 = vrot.slane %v422_v19, 4  ;;  %v432_v22 = vrot.slane %v431_v20, 4  ;;  %576 = vmatprep.subr.bf16.mxu0 %v990_v0 }
  0xe1   : > { %v425_v23 = vsel %vm424_vm7, %v422_v19, %v423_v21  ;;  %v434_v24 = vsel %vm433_vm8, %v431_v20, %v432_v22  ;;  %v853_v25 = vld [vmem:[#allocation2 + $0x48] sm:$0xff]  }
  0xe2   : > { %427 = vst [vmem:[#allocation2 + $0x5c] sm:$0xf] %v425_v23  ;;  %436 = vst [vmem:[#allocation2 + $0x60] sm:$0xf] %v434_v24  ;;  %577 = vmatpush1.bf16.msra.mxu0 %v853_v25 }
  0xe3   : > { %578 = vmatprep.subr.bf16.mxu0 %v990_v0 }
  0xe5   : > { %v854_v26 = vld [vmem:[#allocation2 + $0x50] sm:$0xff]  }
  0xe6   : > { %579 = vmatpush1.bf16.msra.mxu0 %v854_v26 }
  0xe7   : > { %580 = vmatprep.subr.bf16.mxu0 %v990_v0 }
  0xe9   : > { %v855_v27 = vld [vmem:[#allocation2 + $0x58] sm:$0xff]   ;;  %v856_v28 = vld [vmem:[#allocation2 + $0x60] ss:$0 sps:$4 sm:$0xff]  }
  0xea   : > { %581 = vmatpush1.bf16.msra.mxu0 %v855_v27  ;;  %v556_v29 = vsel %vm554_vm9, %v856_v28, 0 }
  0xeb   : > { %582 = vmatprep.subr.bf16.mxu0 %v990_v0 }
  0xee   : > { %583 = vmatpush1.bf16.msra.mxu0 %v556_v29 }
  0xef   : > { %v467_v31 = vpop.permute.xlu0 %466 }
  0xf1   : > { %591 = vmatmul.mubr.bf16.vlgmr.msra.gmra.mrb[0].mxu0 %v719_v30 }
 0x1c4   : > { %v592_v32 = vpop.f32.mrb[0].mxu0 }
 0x1c5   : > { %v593_v33 = vadd.f32 %v592_v32, %v467_v31  ;;  %v594_v34 = vpop.f32.mrb[1].mxu0 }
 0x1c6   : > { %v595_v0 = vpop.f32.mrb[2].mxu0 }
 0x1c7   : > { %598 = vst [vmem:[%s217_s29] sm:$0xff] %v593_v33  ;;  %v596_v3 = vpop.f32.mrb[3].mxu0 }
 0x1c8   : > { %902 = shalt.err (!%p899_p5)
}
 0x1c9   : > { %s903_s8 = scalar_lea.hbm %s1206_s25, 128  ;;  %s907_s21 = scalar_lea.hbm %s1263_s3, 1024 }
 0x1ca   : > { %p904_p7 = scmp.ne.s32.totalorder %s1206_s25, %s903_s8  ;;  %p908_p1 = scmp.lt.u32.totalorder %s1206_s25, %s1263_s3 }
 0x1cb   : > { %p909_p2 = scmp.lt.u32.totalorder %s907_s21, %s903_s8  ;;  %p911_p8 = scmp.lt.u32.totalorder %s903_s8, %s1206_s25 }
 0x1cc   : > { %p905_p10 = pnand %p904_p7, %p1272_p9 }
 0x1cd   : > { %p910_p3 = por %p909_p2, %p908_p1 }
 0x1ce   : > { %p906_p11 = pneg %p905_p10 }
 0x1cf   : > { %p912_p12 = por %p911_p8, %p910_p3 }
 0x1d1   : > { %p913_p0 = pnand %p912_p12, %p906_p11 }
 0x1d3   : > { %916 = shalt.err (!%p913_p0)
}
 0x1d4   : > { %742 = dma.vmem_to_hbm [thread:$0]  (%p1272_p9), %s1208_s30, 128, %s1206_s25, %s600_s15  }
 0x1d5 PF: > { %p753_p6 = scmp.ge.s32.totalorder %s987_s19, 2  ;;  %s628_s29 = sand.u32 1, %s959_s12  }
 0x1d6   : > { %p1273_p13 = scmp.ne.s32.totalorder %s1268_s4, 0  ;;  %s629_s26 = scalar_lea.sflag [#allocation5], %s628_s29 }
 0x1d8   : > { %p749_p4 = pnand %p753_p6, %p1273_p13 }
 0x1da   : > { %954 = dma.done.wait (!%p749_p4), %s629_s26, 128  }
 0x1db   : > { %956 = vsyncadd (!%p749_p4), %s629_s26, 4294967168  ;;  %s19_s19 = sadd.s32 1, %s987_s19   ;;  %s1274_s12 = smov %s963_s13 }
 0x1dc   : > { %p16_p5 = scmp.ge.s32.totalorder %s19_s19, 10   ;;  %s1275_s13 = smov %s967_s14 }
 0x1dd   : > { %s1276_s14 = smov %s1114_s6  ;;  %s1277_s15 = smov %s979_s17 }
 0x1de   : > { %s1278_s16 = smov %s983_s18  ;;  %s1279_s17 = smov %s1282_s22 }
 0x1df   : > { %s1280_s18 = smov %s1286_s23  ;;  %18 = sbr.rel (!%p16_p5) target bundleno = 7 (0x7), region = 77 }
 0x1e6   :  { %634 = vsyncpa [#allocation4], 1 }
 0x1e7   :  { %636 = vsyncpa [#allocation4 + $0x1], 1 }
 0x1e8   :  { %637 = vsyncpa [#allocation5], 1 }
 0x1e9   :  { %639 = vsyncpa [#allocation5 + $0x1], 1 }

</bundles_post_ra>
